<compile_context>
chip_gen: v6e
topology: v6e:2x2x1
jax: 0.10.0
libtpu: 0.0.40
codegen_flags: <defaults>
</compile_context>

<pallas_src>
import functools

import jax
import jax.numpy as jnp
from jax.experimental import pallas as pl
from jax.experimental.pallas import tpu as pltpu

LANES = 128


def masked_mse_kernel(x_ref, t_ref, m_ref, o_ref, *, rows, block_rows, n_blocks):
    # Per-block partial sum of (x - t*m)^2, folded to an (8,128) vreg-shaped tile.
    x = x_ref[...].astype(jnp.float32)
    t = t_ref[...].astype(jnp.float32)
    m = m_ref[...].astype(jnp.float32)
    d = x - t * m
    sq = d * d

    # (block_rows, 128) -> (block_rows//8, 8, 128); leading-axis sum is pure
    # per-lane VPU adds (no cross-lane XLU work in the hot loop).
    o_ref[...] = jnp.sum(sq.reshape(block_rows // 8, 8, LANES), axis=0)[None]

    # Only the last grid step can read past the end of the (rows, 128) array.
    # `rows` / `block_rows` / `n_blocks` are Python ints, so this whole branch
    # disappears when block_rows divides rows; otherwise the masked recompute
    # runs on the final step only (pl.when), keeping the hot loop lean.
    if rows % block_rows != 0:
        @pl.when(pl.program_id(0) == n_blocks - 1)
        def _():
            base = (n_blocks - 1) * block_rows            # static offset
            row_ids = jax.lax.broadcasted_iota(jnp.int32, sq.shape, 0) + base
            sq_m = jnp.where(row_ids < rows, sq, 0.0)     # mask sq, then reduce
            o_ref[...] = jnp.sum(
                sq_m.reshape(block_rows // 8, 8, LANES), axis=0)[None]


def _sublane_multiple(dtype):
    # f32 -> 8, bf16 -> 16, int8/fp8/bool -> 32 (sub-32-bit packs along sublanes).
    return max(8, 32 // jnp.dtype(dtype).itemsize)


def masked_mse(x, t, m, *, block_rows=4096):
    """Pallas MaskedMSE. x, t, m: same shape (e.g. NCHW). Returns scalar f32 mean."""
    assert x.shape == t.shape == m.shape
    n_elems = x.size

    xf, tf, mf = x.reshape(-1), t.reshape(-1), m.reshape(-1)
    rows = n_elems // LANES
    sub = max(_sublane_multiple(a.dtype) for a in (xf, tf, mf))

    # Tiny inputs: launch overhead dominates and the (sub,128) block would
    # exceed the array's row extent -> plain JAX is both safer and faster.
    if rows < sub:
        d = (xf.astype(jnp.float32)
             - tf.astype(jnp.float32) * mf.astype(jnp.float32))
        return jnp.sum(d * d) / jnp.float32(n_elems)

    # Kernel handles the lane-aligned prefix; the <128-element tail is a tiny
    # plain-JAX sum (no jnp.pad -> no full-array HBM copies before the kernel).
    main = rows * LANES
    tail_sum = jnp.float32(0.0)
    if main < n_elems:
        dt = (xf[main:].astype(jnp.float32)
              - tf[main:].astype(jnp.float32) * mf[main:].astype(jnp.float32))
        tail_sum = jnp.sum(dt * dt)

    X = xf[:main].reshape(rows, LANES)
    T = tf[:main].reshape(rows, LANES)
    M = mf[:main].reshape(rows, LANES)

    # Tile sizing: as large as requested (amortize per-step overhead), but
    # capped so medium inputs still yield >=2 grid steps (v7x megacore), and
    # floored to the dtype's sublane packing multiple.
    br = min(block_rows, rows)
    if rows >= 2 * sub:
        br = min(br, ((pl.cdiv(rows, 2) + sub - 1) // sub) * sub)
    br = max(sub, (br // sub) * sub)
    n_blocks = pl.cdiv(rows, br)

    kernel = functools.partial(masked_mse_kernel, rows=rows, block_rows=br,
                               n_blocks=n_blocks)

    in_tile_bytes = sum(jnp.dtype(a.dtype).itemsize
                        for a in (X, T, M)) * br * LANES
    in_bytes = sum(a.size * a.dtype.itemsize for a in (X, T, M))
    out_bytes = n_blocks * 8 * LANES * 4
    # Double-buffered inputs + d/sq intermediates; >=32 MiB (above v5e's 16 MiB
    # default scoped limit), <=48 MiB (headroom under v7x's 64 MiB physical).
    vmem_limit = int(min(48 << 20, max(32 << 20, 4 * in_tile_bytes)))

    partials = pl.pallas_call(
        kernel,
        out_shape=jax.ShapeDtypeStruct((n_blocks, 8, LANES), jnp.float32),
        grid_spec=pltpu.PrefetchScalarGridSpec(
            num_scalar_prefetch=0,
            grid=(n_blocks,),
            in_specs=[
                pl.BlockSpec((br, LANES), lambda i: (i, 0)),
                pl.BlockSpec((br, LANES), lambda i: (i, 0)),
                pl.BlockSpec((br, LANES), lambda i: (i, 0)),
            ],
            out_specs=pl.BlockSpec((1, 8, LANES), lambda i: (i, 0, 0)),
        ),
        compiler_params=pltpu.CompilerParams(
            dimension_semantics=("parallel",),
            vmem_limit_bytes=vmem_limit),
        cost_estimate=pl.CostEstimate(
            flops=4 * main,
            transcendentals=0,
            bytes_accessed=in_bytes + out_bytes),
    )(X, T, M)

    return (jnp.sum(partials) + tail_sum) / jnp.float32(n_elems)


def _ref_loss(x, t, m):
    xf = x.astype(jnp.float32)
    tf = t.astype(jnp.float32)
    mf = m.astype(jnp.float32)
    return jnp.mean((xf - tf * mf) ** 2)


if __name__ == "__main__":
    key = jax.random.PRNGKey(0)

    # 1) Main NCHW case: 2048 elems -> 16 lane-rows, 2 grid blocks, no tail.
    k1, k2, k3, key = jax.random.split(key, 4)
    shape = (2, 4, 16, 16)
    x = jax.random.normal(k1, shape, dtype=jnp.float32)
    t = jax.random.normal(k2, shape, dtype=jnp.float32)
    mask = (jax.random.uniform(k3, shape) > 0.5).astype(jnp.float32)
    loss = jax.block_until_ready(masked_mse(x, t, mask))
    assert jnp.allclose(loss, _ref_loss(x, t, mask), rtol=1e-5, atol=1e-6), \
        ("main", loss, _ref_loss(x, t, mask))

    # 2) Ragged case: 1155 elems -> 9 rows (+3-elem JAX tail), last-block mask path.
    k1, k2, k3, key = jax.random.split(key, 4)
    shape = (3, 5, 7, 11)
    x = jax.random.normal(k1, shape, dtype=jnp.float32)
    t = jax.random.normal(k2, shape, dtype=jnp.float32)
    mask = (jax.random.uniform(k3, shape) > 0.5).astype(jnp.float32)
    loss = jax.block_until_ready(masked_mse(x, t, mask))
    assert jnp.allclose(loss, _ref_loss(x, t, mask), rtol=1e-5, atol=1e-6), \
        ("ragged", loss, _ref_loss(x, t, mask))

    # 3) Narrow-dtype mask (int8): byte-reduced HBM traffic, in-kernel cast.
    k1, k2, k3, key = jax.random.split(key, 4)
    shape = (1, 1, 64, 128)
    x = jax.random.normal(k1, shape, dtype=jnp.float32)
    t = jax.random.normal(k2, shape, dtype=jnp.float32)
    mask = (jax.random.uniform(k3, shape) > 0.5).astype(jnp.int8)
    loss = jax.block_until_ready(masked_mse(x, t, mask))
    assert jnp.allclose(loss, _ref_loss(x, t, mask), rtol=1e-5, atol=1e-6), \
        ("int8_mask", loss, _ref_loss(x, t, mask))

    # 4) Tiny input -> plain-JAX fallback path.
    k1, k2, k3, key = jax.random.split(key, 4)
    shape = (2, 3)
    x = jax.random.normal(k1, shape, dtype=jnp.float32)
    t = jax.random.normal(k2, shape, dtype=jnp.float32)
    mask = (jax.random.uniform(k3, shape) > 0.5).astype(jnp.float32)
    loss = jax.block_until_ready(masked_mse(x, t, mask))
    assert jnp.allclose(loss, _ref_loss(x, t, mask), rtol=1e-5, atol=1e-6), \
        ("tiny", loss, _ref_loss(x, t, mask))

    print("KERNEL_OK")
</pallas_src>

<mosaic_0001>
module attributes {stable_mosaic.version = 11 : i64} {
  func.func @masked_mse_kernel(%arg0: i32, %arg1: memref<8x128xf32, #tpu.memory_space<vmem>>, %arg2: memref<8x128xf32, #tpu.memory_space<vmem>>, %arg3: memref<8x128xf32, #tpu.memory_space<vmem>>, %arg4: memref<1x8x128xf32, #tpu.memory_space<vmem>>) attributes {dimension_semantics = [#tpu.dimension_semantics<parallel>], iteration_bounds = array<i64: 2>, scalar_prefetch = 0 : i64, scratch_operands = 0 : i64, tpu.core_type = #tpu.core_type<tc>, window_params = [{transform_indices = @transform_0, window_bounds = array<i64: 8, 128>}, {transform_indices = @transform_1, window_bounds = array<i64: 8, 128>}, {transform_indices = @transform_2, window_bounds = array<i64: 8, 128>}, {transform_indices = @transform_3, window_bounds = array<i64: 1, 8, 128>}]} {
    %c0 = arith.constant 0 : index
    %c0_0 = arith.constant 0 : index
    %0 = vector.load %arg1[%c0, %c0_0] : memref<8x128xf32, #tpu.memory_space<vmem>>, vector<8x128xf32>
    %c0_1 = arith.constant 0 : index
    %c0_2 = arith.constant 0 : index
    %1 = vector.load %arg2[%c0_1, %c0_2] : memref<8x128xf32, #tpu.memory_space<vmem>>, vector<8x128xf32>
    %c0_3 = arith.constant 0 : index
    %c0_4 = arith.constant 0 : index
    %2 = vector.load %arg3[%c0_3, %c0_4] : memref<8x128xf32, #tpu.memory_space<vmem>>, vector<8x128xf32>
    %3 = arith.mulf %1, %2 : vector<8x128xf32>
    %4 = arith.subf %0, %3 : vector<8x128xf32>
    %5 = arith.mulf %4, %4 : vector<8x128xf32>
    %6 = vector.shape_cast %5 : vector<8x128xf32> to vector<1x8x128xf32>
    %cst = arith.constant dense<0.000000e+00> : vector<8x128xf32>
    %7 = vector.multi_reduction <add>, %6, %cst [0] : vector<1x8x128xf32> to vector<8x128xf32>
    %8 = vector.shape_cast %7 : vector<8x128xf32> to vector<1x8x128xf32>
    %c0_5 = arith.constant 0 : index
    %c0_6 = arith.constant 0 : index
    %c0_7 = arith.constant 0 : index
    %9 = vector.load %arg4[%c0_5, %c0_6, %c0_7] : memref<1x8x128xf32, #tpu.memory_space<vmem>>, vector<1x8x128xf32>
    tpu.vector_store %arg4[%c0_5, %c0_6, %c0_7], %8 {strides = array<i32>} : memref<1x8x128xf32, #tpu.memory_space<vmem>>, vector<1x8x128xf32>,
    return
  }
  func.func @transform_0(%arg0: i32) -> (i32, i32) {
    %c0_i32 = arith.constant 0 : i32
    %c0_i32_0 = arith.constant 0 : i32
    return %arg0, %c0_i32 : i32, i32
  }
  func.func @transform_1(%arg0: i32) -> (i32, i32) {
    %c0_i32 = arith.constant 0 : i32
    %c0_i32_0 = arith.constant 0 : i32
    return %arg0, %c0_i32 : i32, i32
  }
  func.func @transform_2(%arg0: i32) -> (i32, i32) {
    %c0_i32 = arith.constant 0 : i32
    %c0_i32_0 = arith.constant 0 : i32
    return %arg0, %c0_i32 : i32, i32
  }
  func.func @transform_3(%arg0: i32) -> (i32, i32, i32) {
    %c0_i32 = arith.constant 0 : i32
    %c0_i32_0 = arith.constant 0 : i32
    %c0_i32_1 = arith.constant 0 : i32
    return %arg0, %c0_i32, %c0_i32_0 : i32, i32, i32
  }
}

</mosaic_0001>

<bundles_post_ra>
// kernel: tpu_custom_call.1
= control target key start
LH: loop header
LB: loop body
LE: loop exit
PB: predicated region body
PF: predicated region fallthrough
CT: control target
= control target key end

     0   :  { %s845_s0 = inlined_call_operand.hbm [shape: f32[16,128], index: 0, kind: input, shape index: {}]   ;;  %s846_s1 = inlined_call_operand.hbm [shape: f32[16,128], index: 1, kind: input, shape index: {}]   ;;  %s847_s2 = inlined_call_operand.hbm [shape: f32[16,128], index: 2, kind: input, shape index: {}]   ;;  %s848_s3 = inlined_call_operand.hbm [shape: f32[2,8,128], index: 3, kind: output, shape index: {}]  }
   0x1   :  { %852 = sst [smem:[#allocation13_spill]] %s845_s0 }
   0x2   :  { %853 = sst [smem:[#allocation14_spill]] %s846_s1 }
   0x3   :  { %8 = vsyncpa [#allocation3], 0 }
   0x4   :  { %10 = vsyncpa [#allocation3 + $0x1], 0 }
   0x5   :  { %11 = vsyncpa [#allocation6], 0 }
   0x6   :  { %13 = vsyncpa [#allocation6 + $0x1], 0 }
   0x7   :  { %14 = vsyncpa [#allocation4], 0 }
   0x8   :  { %16 = vsyncpa [#allocation4 + $0x1], 0  ;;  %s644_s12 = smov 0   ;;  %s646_s13 = smov 0  }
   0x9   :  { %s648_s14 = smov 0   ;;  %s650_s15 = smov 0  }
   0xa LB: > { %s665_s16 = sadd.s32 4294967295, %s618_s15   ;;  %s392_s17 = sadd.s32 4294967294, %s618_s15   ;;  %s618_s15 = sphi %s650_s15, %s874_s15   ;;  %s614_s14 = sphi %s648_s14, %s873_s14   ;;  %s610_s13 = sphi %s646_s13, %s872_s13   ;;  %s606_s12 = sphi %s644_s12, %s871_s12  }
   0xb   : > { %s669_s18 = sadd.s32 1, %s618_s15   ;;  %s29_s19 = sadd.s32 1, %s614_s14 }
   0xc   : > { %s26_s20 = ssub.s32 %s618_s15, %s669_s18  ;;  %p36_p0 = scmp.ne.s32.totalorder %s614_s14, %s610_s13 }
   0xd   : > { %p27_p1 = scmp.eq.s32.totalorder %s26_s20, 0  ;;  %p37_p2 = scmp.eq.s32.totalorder %s618_s15, 0 }
   0xe   : > { %p42_p3 = scmp.ne.s32.totalorder %s610_s13, %s606_s12  ;;  %p43_p4 = scmp.eq.s32.totalorder %s665_s16, 0 }
   0xf   : > { %s681_s21 = scalar_select %p27_p1, %s614_s14, %s29_s19  }
  0x10   : > { %p38_p5 = por %p37_p2, %p36_p0  ;;  %p683_p6 = por %p43_p4, %p42_p3 }
  0x11   : > { %854 = sst [smem:[#allocation12_spill]] %s681_s21  ;;  %p118_p7 = scmp.eq.s32.totalorder %s665_s16, 1 }
  0x12   : > { %s855_s22 = scalar_select %p683_p6, 1, 0 }
  0x13   : > { %p124_p8 = scmp.eq.s32.totalorder %s392_s17, 1  ;;  %p432_p10 = scmp.lt.s32.totalorder %s618_s15, 2 }
  0x14   : > { %p690_p11 = por %p118_p7, %p36_p0  ;;  %s849_s25 = sand.u32 1, %s614_s14  }
  0x15   : > { %p694_p12 = por %p124_p8, %p42_p3  ;;  %s700_s26 = sshll.u32 %s618_s15, 7 }
  0x16   : > { %s856_s23 = scalar_select %p690_p11, 1, 0 }
  0x17   : > { %s857_s24 = scalar_select %p694_p12, 1, 0 }
  0x18   : > { %s704_s27 = sshll.u32 %s849_s25, 3  ;;  %p706_p13 = pnand %p432_p10, %p38_p5 }
  0x19   : > { %s162_s29 = sand.u32 1, %s618_s15   ;;  %s859_s1 = sld [smem:[#allocation14_spill]] }
  0x1a   : > { %s166_s6 = scalar_lea.vmem [#allocation5], %s704_s27  ;;  %s719_s8 = scalar_lea.sflag [#allocation6], %s162_s29 }
  0x1b   : > { %s173_s7 = sshll.u32 %s166_s6, 4  ;;  %p725_p2 = pneg %p706_p13  ;;  %s174_s7 = int_to_ptr.vmem [resolvable:$true] %s173_s7 }
  0x1f   : > { %s715_s5 = scalar_lea.hbm %s859_s1, %s700_s26  ;;  %s471_s19 = scalar_lea.hbm %s859_s1, 256 }
  0x20   : > { %s466_s9 = scalar_lea.hbm %s715_s5, 128  ;;  %p472_p5 = scmp.lt.s32.totalorder %s715_s5, %s859_s1 }
  0x21   : > { %p467_p1 = scmp.ne.s32.totalorder %s715_s5, %s466_s9  ;;  %p473_p7 = scmp.lt.s32.totalorder %s471_s19, %s466_s9 }
  0x23   : > { %p469_p3 = pnand %p725_p2, %p467_p1  ;;  %p474_p8 = por %p473_p7, %p472_p5 }
  0x25   : > { %p470_p4 = pneg %p469_p3 }
  0x27   : > { %p475_p10 = pnand %p474_p8, %p470_p4 }
  0x29   : > { %478 = shalt.err (!%p475_p10)
}
  0x2a   : > { %s479_s29 = scalar_lea.vmem %s174_s7, 128  ;;  %s620_s4 = smov [#allocation5]  }
  0x2b   : > { %p480_p9 = scmp.ne.s32.totalorder %s174_s7, %s479_s29  ;;  %s484_s6 = sshll.u32 %s620_s4, 4  ;;  %s485_s6 = int_to_ptr.vmem [resolvable:$false] %s484_s6 }
  0x2c   : > { %s486_s25 = scalar_lea.vmem %s485_s6, 256  ;;  %p487_p1 = scmp.lt.s32.totalorder %s174_s7, %s485_s6 }
  0x2d   : > { %p482_p0 = pnand %p480_p9, %p725_p2  ;;  %p488_p3 = scmp.lt.s32.totalorder %s486_s25, %s479_s29 }
  0x2f   : > { %p483_p12 = pneg %p482_p0  ;;  %p489_p11 = por %p488_p3, %p487_p1 }
  0x31   : > { %p490_p6 = pnand %p489_p11, %p483_p12 }
  0x33   : > { %493 = shalt.err (!%p490_p6)
}
  0x34   : > { %424 = dma.hbm_to_vmem [thread:$0]  (!%p706_p13), %s715_s5, 128, %s174_s7, %s719_s8  }
  0x35   : > { %p196_p9 = scmp.lt.s32.totalorder %s618_s15, 3  ;;  %s861_s0 = sld [smem:[#allocation13_spill]] }
  0x36   : > { %p862_p0 = scmp.ge.s32.totalorder %s618_s15, 1  ;;  %s148_s19 = scalar_lea.vmem [#allocation2], %s704_s27 }
  0x37   : > { %s155_s20 = sshll.u32 %s148_s19, 4  ;;  %s864_s30 = sand.u32 1, %s614_s14   ;;  %s156_s20 = int_to_ptr.vmem [resolvable:$true] %s155_s20 }
  0x38   : > { %p753_p6 = pnand %p862_p0, %p196_p9  ;;  %s145_s29 = scalar_lea.sflag [#allocation3], %s864_s30 }
  0x3a   : > { %s863_s25 = scalar_select %p753_p6, 1, 0 }
  0x3b   : > { %s749_s17 = scalar_lea.hbm %s861_s0, %s700_s26  ;;  %s499_s6 = scalar_lea.hbm %s861_s0, 256 }
  0x3c   : > { %s494_s5 = scalar_lea.hbm %s749_s17, 128  ;;  %p500_p5 = scmp.lt.s32.totalorder %s749_s17, %s861_s0 }
  0x3d   : > { %p495_p11 = scmp.ne.s32.totalorder %s749_s17, %s494_s5  ;;  %p501_p7 = scmp.lt.s32.totalorder %s499_s6, %s494_s5 }
  0x3f   : > { %p497_p12 = pnand %p495_p11, %p725_p2  ;;  %p502_p8 = por %p501_p7, %p500_p5 }
  0x41   : > { %p498_p4 = pneg %p497_p12 }
  0x43   : > { %p503_p10 = pnand %p502_p8, %p498_p4 }
  0x45   : > { %506 = shalt.err (!%p503_p10)
}
  0x46   : > { %s507_s19 = scalar_lea.vmem %s156_s20, 128  ;;  %s621_s30 = smov [#allocation2]  }
  0x47   : > { %p508_p1 = scmp.ne.s32.totalorder %s156_s20, %s507_s19  ;;  %s512_s1 = sshll.u32 %s621_s30, 4  ;;  %s513_s1 = int_to_ptr.vmem [resolvable:$false] %s512_s1 }
  0x48   : > { %s514_s21 = scalar_lea.vmem %s513_s1, 256  ;;  %p515_p0 = scmp.lt.s32.totalorder %s156_s20, %s513_s1 }
  0x49   : > { %p510_p3 = pnand %p508_p1, %p725_p2  ;;  %p516_p11 = scmp.lt.s32.totalorder %s514_s21, %s507_s19 }
  0x4b   : > { %p511_p9 = pneg %p510_p3  ;;  %p517_p12 = por %p516_p11, %p515_p0 }
  0x4d   : > { %p518_p6 = pnand %p517_p12, %p511_p9 }
  0x4f   : > { %521 = shalt.err (!%p518_p6)
}
  0x50   : > { %421 = dma.hbm_to_vmem [thread:$0]  (!%p706_p13), %s749_s17, 128, %s156_s20, %s145_s29  }
  0x51   : > { %s189_s4 = scalar_lea.hbm %s847_s2, %s700_s26  ;;  %s184_s6 = scalar_lea.vmem [#allocation7], %s704_s27 }
  0x52   : > { %s191_s9 = sshll.u32 %s184_s6, 4  ;;  %s522_s11 = scalar_lea.hbm %s189_s4, 128  ;;  %s192_s9 = int_to_ptr.vmem [resolvable:$true] %s191_s9 }
  0x53   : > { %p523_p4 = scmp.ne.s32.totalorder %s189_s4, %s522_s11  ;;  %s527_s19 = scalar_lea.hbm %s847_s2, 256 }
  0x54   : > { %p528_p6 = scmp.lt.s32.totalorder %s189_s4, %s847_s2  ;;  %p529_p8 = scmp.lt.s32.totalorder %s527_s19, %s522_s11 }
  0x55   : > { %p525_p5 = pnand %p523_p4, %p725_p2 }
  0x56   : > { %p530_p10 = por %p529_p8, %p528_p6 }
  0x57   : > { %p526_p7 = pneg %p525_p5 }
  0x59   : > { %p531_p1 = pnand %p530_p10, %p526_p7 }
  0x5b   : > { %534 = shalt.err (!%p531_p1)
}
  0x5c   : > { %s535_s26 = scalar_lea.vmem %s192_s9, 128  ;;  %s622_s27 = smov [#allocation7]  }
  0x5d   : > { %p536_p3 = scmp.ne.s32.totalorder %s192_s9, %s535_s26  ;;  %s540_s17 = sshll.u32 %s622_s27, 4  ;;  %s541_s17 = int_to_ptr.vmem [resolvable:$false] %s540_s17 }
  0x5e   : > { %s542_s20 = scalar_lea.vmem %s541_s17, 256  ;;  %p543_p11 = scmp.lt.s32.totalorder %s192_s9, %s541_s17 }
  0x5f   : > { %p538_p9 = pnand %p536_p3, %p725_p2  ;;  %p544_p12 = scmp.lt.s32.totalorder %s542_s20, %s535_s26 }
  0x61   : > { %p539_p0 = pneg %p538_p9  ;;  %p545_p4 = por %p544_p12, %p543_p11 }
  0x63   : > { %p546_p5 = pnand %p545_p4, %p539_p0 }
  0x65   : > { %549 = shalt.err (!%p546_p5)
}
  0x66   : > { %427 = dma.hbm_to_vmem [thread:$0]  (!%p706_p13), %s189_s4, 128, %s192_s9, %s719_s8  }
  0x67   : > { %p865_p7 = scmp.ne.s32.totalorder %s863_s25, 0 }
  0x68   : > { %s797_s0 = sand.u32 (!%p865_p7), 1, %s610_s13   ;;  %p866_p2 = scmp.ne.s32.totalorder (!%p865_p7), %s855_s22, 0 }
  0x69   : > { %200 = sbr.rel (%p865_p7) target bundleno = 139 (0x8b), region = 32  ;;  %s402_s10 = sshll.u32 (!%p865_p7), %s797_s0, 3 }
  0x6a   : > { %s203_s29 = scalar_lea.sflag (!%p865_p7), [#allocation3], %s797_s0  ;;  %s206_s5 = scalar_lea.vmem (!%p865_p7), [#allocation2], %s402_s10 }
  0x6e   : > { %593 = dma.done.wait (%p866_p2), %s203_s29, 128  }
  0x6f   : > { %595 = vsyncadd (%p866_p2), %s203_s29, 4294967168  ;;  %s211_s28 = sand.u32 1, %s665_s16   ;;  %s215_s25 = scalar_lea.vmem [#allocation5], %s402_s10 }
  0x70   : > { %s212_s8 = scalar_lea.sflag [#allocation6], %s211_s28 }
  0x71   : > { %597 = dma.done.wait (%p866_p2), %s212_s8, 256  }
  0x72   : > { %599 = vsyncadd (%p866_p2), %s212_s8, 4294967040  ;;  %v257_v0 = vld [vmem:[%s206_s5] sm:$0xff]  ;;  %v258_v1 = vld [vmem:[%s215_s25] sm:$0xff]  ;;  %s224_s7 = scalar_lea.vmem [#allocation7], %s402_s10  ;;  %s256_s4 = scalar_lea.vmem [#allocation8], %s402_s10 }
  0x73   : > { %v259_v2 = vld [vmem:[%s224_s7] sm:$0xff]  ;;  %s279_s6 = sshll.u32 %s256_s4, 4  ;;  %s407_s9 = sshll.u32 %s665_s16, 7  ;;  %s280_s6 = int_to_ptr.vmem [resolvable:$true] %s279_s6 }
  0x74   : > { %v260_v3 = vmul.f32 %v259_v2, %v258_v1  ;;  %s277_s21 = scalar_lea.hbm %s848_s3, %s407_s9  ;;  %s266_s22 = scalar_lea.sflag [#allocation4], %s797_s0 }
  0x75   : > { %s550_s19 = scalar_lea.vmem %s280_s6, 128  ;;  %p867_p6 = scmp.ne.s32.totalorder %s856_s23, 0 }
  0x76   : > { %v261_v4 = vsub.f32 %v257_v0, %v260_v3  ;;  %p551_p13 = scmp.ne.s32.totalorder %s280_s6, %s550_s19  ;;  %s623_s30 = smov [#allocation8]  }
  0x77   : > { %s554_s26 = sshll.u32 %s623_s30, 4  ;;  %s555_s26 = int_to_ptr.vmem [resolvable:$false] %s554_s26 }
  0x78   : > { %v262_v5 = vmul.f32 %v261_v4, %v261_v4  ;;  %p552_p8 = pnand %p551_p13, %p867_p6  ;;  %s556_s27 = scalar_lea.vmem %s555_s26, 256 }
  0x79   : > { %p557_p1 = scmp.lt.s32.totalorder %s280_s6, %s555_s26  ;;  %p558_p3 = scmp.lt.s32.totalorder %s556_s27, %s550_s19 }
  0x7a   : > { %264 = vst [vmem:[%s256_s4] sm:$0xff] %v262_v5  ;;  %p553_p10 = pneg %p552_p8 }
  0x7b   : > { %p559_p9 = por %p558_p3, %p557_p1 }
  0x7d   : > { %p560_p0 = pnand %p559_p9, %p553_p10 }
  0x7f   : > { %563 = shalt.err (!%p560_p0)
}
  0x80   : > { %s564_s16 = scalar_lea.hbm %s277_s21, 128  ;;  %s568_s0 = scalar_lea.hbm %s848_s3, 256 }
  0x81   : > { %p565_p11 = scmp.ne.s32.totalorder %s277_s21, %s564_s16  ;;  %p569_p5 = scmp.lt.s32.totalorder %s277_s21, %s848_s3 }
  0x82   : > { %p570_p7 = scmp.lt.s32.totalorder %s568_s0, %s564_s16 }
  0x83   : > { %p566_p12 = pnand %p565_p11, %p867_p6 }
  0x84   : > { %p571_p2 = por %p570_p7, %p569_p5 }
  0x85   : > { %p567_p4 = pneg %p566_p12 }
  0x87   : > { %p572_p13 = pnand %p571_p2, %p567_p4 }
  0x89   : > { %575 = shalt.err (!%p572_p13)
}
  0x8a   : > { %416 = dma.vmem_to_hbm [thread:$0]  (%p867_p6), %s280_s6, 128, %s277_s21, %s266_s22  }
  0x8b PF: > { %s291_s5 = sand.u32 1, %s606_s12   ;;  %p868_p8 = scmp.ne.s32.totalorder %s857_s24, 0 }
  0x8c   : > { %p869_p10 = scmp.ge.s32.totalorder %s618_s15, 2  ;;  %s292_s28 = scalar_lea.sflag [#allocation4], %s291_s5 }
  0x8e   : > { %p429_p1 = pnand %p869_p10, %p868_p8 }
  0x90   : > { %p430_p3 = pneg %p429_p1 }
  0x92   : > { %601 = dma.done.wait (%p430_p3), %s292_s28, 128  }
  0x93   : > { %603 = vsyncadd (%p430_p3), %s292_s28, 4294967168  ;;  %s870_s8 = sld [smem:[#allocation12_spill]]  ;;  %p19_p9 = scmp.ge.s32.totalorder %s669_s18, 4  }
  0x94   : > { %s871_s12 = smov %s610_s13  ;;  %s872_s13 = smov %s614_s14 }
  0x95   : > { %s874_s15 = smov %s669_s18  ;;  %21 = sbr.rel (!%p19_p9) target bundleno = 10 (0xa), region = 101 }
  0x99   : > { %s873_s14 = smov %s870_s8 }
  0x9a   :  { %297 = vsyncpa [#allocation3], 1 }
  0x9b   :  { %299 = vsyncpa [#allocation3 + $0x1], 1 }
  0x9c   :  { %300 = vsyncpa [#allocation6], 1 }
  0x9d   :  { %302 = vsyncpa [#allocation6 + $0x1], 1 }
  0x9e   :  { %303 = vsyncpa [#allocation4], 1 }
  0x9f   :  { %305 = vsyncpa [#allocation4 + $0x1], 1 }

</bundles_post_ra>
